<compile_context>
chip_gen: v6e
topology: v6e:2x2x1
jax: 0.10.0
libtpu: 0.0.40
codegen_flags: <defaults>
</compile_context>

<pallas_src>
import functools

import jax
import jax.numpy as jnp
from jax import lax
from jax.experimental import pallas as pl
from jax.experimental.pallas import tpu as pltpu


def _round_up(x, m):
    return (x + m - 1) // m * m


def _vmem_capacity_bytes():
    """Physical per-core VMEM for the current generation; conservative fallback 64 MiB."""
    try:
        if jax.devices()[0].platform == "tpu":
            return int(pltpu.get_tpu_info().vmem_capacity_bytes)
    except Exception:
        pass
    return 64 << 20


def _pad_gate_cols(w_t, H, Hp):
    """w_t: (X, 4H) -> (X, 4*Hp), zero-padding each of the 4 gate blocks [i,f,g,o] to Hp."""
    X = w_t.shape[0]
    w4 = w_t.reshape(X, 4, H)
    w4 = jnp.pad(w4, ((0, 0), (0, 0), (0, Hp - H)))
    return w4.reshape(X, 4 * Hp)


def _sigmoid_via_tanh(x):
    # sigmoid(x) == 0.5 * tanh(0.5 * x) + 0.5  (exact identity; single EUP op)
    return 0.5 * jnp.tanh(0.5 * x) + 0.5


def _lstm_chunk_kernel(g_ref, whh_ref, h0_ref, c0_ref,
                       out_ref, h_ref, c_ref,
                       *, tc, hp, t_rem, last_chunk):
    """One time-chunk of the LSTM recurrence.

    g_ref   : (Tc, Bb, 4*Hp)  precomputed x@W_ih^T + bias (bf16 or f32 storage)
    whh_ref : (Hp, 4*Hp)      hidden->gates weight (f32, resident)
    h0_ref  : (Bb, Hp)        initial hidden state
    c0_ref  : (Bb, Hp)        initial cell state
    out_ref : (Tc, Bb, Hp)    per-timestep hidden outputs for this chunk
    h_ref   : (Bb, Hp)        resident hidden state (accumulator-style output)
    c_ref   : (Bb, Hp)        resident cell state   (accumulator-style output)
    """
    chunk = pl.program_id(1)

    @pl.when(chunk == 0)
    def _():
        h_ref[...] = h0_ref[...]
        c_ref[...] = c0_ref[...]

    h = h_ref[...]
    c = c_ref[...]
    w_hh = whh_ref[...]                      # loaded once per chunk
    if t_rem:                                # only when T % Tc != 0
        not_last = chunk != last_chunk

    # Static Python loop: static slices / stores, mask emitted only on the true tail steps.
    for s in range(tc):
        # Single recurrent MXU matmul per step; input projection + bias precomputed.
        gates = g_ref[s].astype(jnp.float32) + jnp.dot(
            h, w_hh, preferred_element_type=jnp.float32)
        i_g = _sigmoid_via_tanh(gates[:, 0 * hp:1 * hp])
        f_g = _sigmoid_via_tanh(gates[:, 1 * hp:2 * hp])
        g_g = jnp.tanh(gates[:, 2 * hp:3 * hp])
        o_g = _sigmoid_via_tanh(gates[:, 3 * hp:4 * hp])
        c_new = f_g * c + i_g * g_g
        h_new = o_g * jnp.tanh(c_new)
        if t_rem and s >= t_rem:
            # Only steps past T % Tc can be padding, and only on the last chunk.
            c_new = jnp.where(not_last, c_new, c)
            h_new = jnp.where(not_last, h_new, h)
        out_ref[s] = h_new.astype(out_ref.dtype)
        h, c = h_new, c_new

    h_ref[...] = h
    c_ref[...] = c


@functools.partial(jax.jit, static_argnames=("time_chunk", "gates_bf16",
                                              "batch_blocks", "time_major_output"))
def lstm_forward(x, w_ih, w_hh, b_ih, b_hh, h0=None, c0=None, *,
                 time_chunk=None, gates_bf16=True, batch_blocks=None,
                 time_major_output=False):
    """Runs the LSTMCell recurrence over a sequence.

    x: (B, T, I) batch-first.  Weights use torch.nn.LSTMCell layout:
      w_ih: (4H, I), w_hh: (4H, H), b_ih/b_hh: (4H,), gate order [i, f, g, o].
    Optional h0/c0: (B, H) initial state (zeros if None).
    Returns (output, h_last, c_last).  output is (B, T, H) (or (T, B, H) if
    time_major_output=True); h_last/c_last are (B, H) in x.dtype.
    """
    B, T, I = x.shape
    H = w_hh.shape[1]
    f32 = jnp.float32
    gdt = jnp.bfloat16 if gates_bf16 else f32

    # --- alignment / tiling choices ---
    Hp = _round_up(H, 128)                      # lane-aligned per-gate width
    sub = 16 if gates_bf16 else 8               # sublane alignment of the batch dim
    nb = 1 if batch_blocks is None else batch_blocks   # 1 on 1-TC chips (v5e/v6e)
    Bp = _round_up(B, sub * nb)
    Bb = Bp // nb

    gate_isz = jnp.dtype(gdt).itemsize
    out_dtype = x.dtype
    out_isz = jnp.dtype(out_dtype).itemsize

    # --- generation-aware VMEM budget ---
    capacity = _vmem_capacity_bytes()
    budget = (capacity * 3) // 4                # leave headroom for compiler scratch
    whh_bytes = Hp * 4 * Hp * 4                 # f32 resident weight
    single_buffer_whh = (2 * whh_bytes) > (budget // 4)
    whh_resident = whh_bytes * (1 if single_buffer_whh else 2)
    state_bytes = 6 * Bb * Hp * 4               # h0/c0 in-blocks + h/c out-blocks (approx)

    if time_chunk is None:
        per_tc = 2 * Bb * 4 * Hp * gate_isz + 2 * Bb * Hp * out_isz   # double-buffered streams
        avail = max(budget - whh_resident - state_bytes - (2 << 20), per_tc)
        Tc = int(max(1, min(T, 32, avail // per_tc)))
    else:
        Tc = max(1, min(time_chunk, T))
    nc = pl.cdiv(T, Tc)
    Tp = nc * Tc

    # --- repack / pad parameters (lane-pad each gate block to Hp) ---
    wih_p = _pad_gate_cols(w_ih.astype(f32).T, H, Hp)                      # (I, 4Hp)
    whh_p = _pad_gate_cols(w_hh.astype(f32).T, H, Hp)                      # (H, 4Hp)
    whh_p = jnp.pad(whh_p, ((0, Hp - H), (0, 0)))                          # (Hp, 4Hp) f32
    bias_p = _pad_gate_cols((b_ih + b_hh).astype(f32)[None, :], H, Hp)[0]  # (4Hp,)

    # --- hoisted input projection: one big f32 matmul for all timesteps (bias folded) ---
    x_p = jnp.pad(x.astype(f32), ((0, Bp - B), (0, 0), (0, 0)))            # (Bp, T, I)
    gates_all = jnp.einsum("bti,ig->tbg", x_p, wih_p,
                           preferred_element_type=jnp.float32)             # (T, Bp, 4Hp)
    gates_all = (gates_all + bias_p[None, None, :]).astype(gdt)            # storage cast only
    gates_all = jnp.pad(gates_all, ((0, Tp - T), (0, 0), (0, 0)))          # (Tp, Bp, 4Hp)

    def _pad_state(s):
        if s is None:
            return jnp.zeros((Bp, Hp), f32)
        return jnp.pad(s.astype(f32), ((0, Bp - B), (0, Hp - H)))

    h0_p = _pad_state(h0)
    c0_p = _pad_state(c0)

    kernel = functools.partial(_lstm_chunk_kernel, tc=Tc, hp=Hp,
                               t_rem=(T % Tc) if Tp != T else 0,
                               last_chunk=nc - 1)

    # VMEM budgeting (double-buffered streaming blocks) + advisory cost estimate.
    vmem_needed = (2 * Tc * Bb * 4 * Hp * gate_isz
                   + 2 * Tc * Bb * Hp * out_isz
                   + whh_resident + state_bytes + (2 << 20))
    vmem_limit = int(min(max(vmem_needed, 32 << 20), capacity))

    cost = pl.CostEstimate(
        flops=int(2 * Tp * Bp * Hp * 4 * Hp + 10 * Tp * Bp * Hp),
        transcendentals=int(5 * Tp * Bp * Hp),
        bytes_accessed=int(Tp * Bp * 4 * Hp * gate_isz + Tp * Bp * Hp * out_isz
                           + whh_bytes + 6 * Bp * Hp * 4),
    )

    if single_buffer_whh:
        whh_spec = pl.BlockSpec((Hp, 4 * Hp), lambda b, c: (0, 0),
                                pipeline_mode=pl.Buffered(1))
    else:
        whh_spec = pl.BlockSpec((Hp, 4 * Hp), lambda b, c: (0, 0))

    out_tm, h_last, c_last = pl.pallas_call(
        kernel,
        out_shape=(
            jax.ShapeDtypeStruct((Tp, Bp, Hp), out_dtype),
            jax.ShapeDtypeStruct((Bp, Hp), f32),
            jax.ShapeDtypeStruct((Bp, Hp), f32),
        ),
        grid_spec=pltpu.PrefetchScalarGridSpec(
            num_scalar_prefetch=0,
            grid=(nb, nc),                                                  # (batch, time-chunk)
            in_specs=[
                pl.BlockSpec((Tc, Bb, 4 * Hp), lambda b, c: (c, b, 0)),     # gate chunk
                whh_spec,                                                   # W_hh^T (resident)
                pl.BlockSpec((Bb, Hp), lambda b, c: (b, 0)),                # h0
                pl.BlockSpec((Bb, Hp), lambda b, c: (b, 0)),                # c0
            ],
            out_specs=[
                pl.BlockSpec((Tc, Bb, Hp), lambda b, c: (c, b, 0)),         # per-step outputs
                pl.BlockSpec((Bb, Hp), lambda b, c: (b, 0)),                # h (resident)
                pl.BlockSpec((Bb, Hp), lambda b, c: (b, 0)),                # c (resident)
            ],
        ),
        compiler_params=pltpu.CompilerParams(
            dimension_semantics=("parallel", "arbitrary"),
            vmem_limit_bytes=vmem_limit,
        ),
        cost_estimate=cost,
    )(gates_all, whh_p, h0_p, c0_p)

    out = out_tm[:T, :B, :H]
    if not time_major_output:
        out = jnp.transpose(out, (1, 0, 2))
    h_last = h_last[:B, :H].astype(x.dtype)
    c_last = c_last[:B, :H].astype(x.dtype)
    return out, h_last, c_last


# ----------------------------- module-level wrappers -----------------------------

class LSTMStateTuple:
    def __init__(self, h, c):
        self.h = h
        self.c = c


class LSTMCellPallas:
    """Mirrors the PyTorch module: Dropout(1 - input_keep_prob) + nn.LSTMCell.

    input_keep_prob=1 (the module default) makes the Dropout an identity.
    """

    def __init__(self, input_size, hidden_size, key, input_keep_prob=1.0):
        if input_keep_prob != 1.0:
            # TODO(synk): training-mode input dropout (keep_prob < 1) is not implemented.
            raise NotImplementedError("only input_keep_prob=1 is supported")
        self.hidden_size = hidden_size
        k1, k2, k3, k4 = jax.random.split(key, 4)
        bound = 1.0 / (hidden_size ** 0.5)
        self.w_ih = jax.random.uniform(k1, (4 * hidden_size, input_size),
                                       jnp.float32, -bound, bound)
        self.w_hh = jax.random.uniform(k2, (4 * hidden_size, hidden_size),
                                       jnp.float32, -bound, bound)
        self.b_ih = jax.random.uniform(k3, (4 * hidden_size,),
                                       jnp.float32, -bound, bound)
        self.b_hh = jax.random.uniform(k4, (4 * hidden_size,),
                                       jnp.float32, -bound, bound)

    def __call__(self, x, state=None):
        """x: (B, input_size) — one timestep, exactly like torch.nn.LSTMCell."""
        h0 = state.h if state is not None else None
        c0 = state.c if state is not None else None
        _, h, c = lstm_forward(x[:, None, :], self.w_ih, self.w_hh, self.b_ih,
                               self.b_hh, h0, c0, time_chunk=1, gates_bf16=False)
        return LSTMStateTuple(h, c)


# ----------------------------- pure-JAX references -----------------------------

def lstm_cell_reference(x, h, c, w_ih, w_hh, b_ih, b_hh):
    H = w_hh.shape[1]
    gates = x @ w_ih.T + h @ w_hh.T + b_ih + b_hh
    i = jax.nn.sigmoid(gates[:, 0 * H:1 * H])
    f = jax.nn.sigmoid(gates[:, 1 * H:2 * H])
    g = jnp.tanh(gates[:, 2 * H:3 * H])
    o = jax.nn.sigmoid(gates[:, 3 * H:4 * H])
    c_new = f * c + i * g
    h_new = o * jnp.tanh(c_new)
    return h_new, c_new


def lstm_sequence_reference(x, w_ih, w_hh, b_ih, b_hh, h0=None, c0=None):
    B, T, _ = x.shape
    H = w_hh.shape[1]
    h = jnp.zeros((B, H), jnp.float32) if h0 is None else h0
    c = jnp.zeros((B, H), jnp.float32) if c0 is None else c0

    def step(carry, x_t):
        h, c = carry
        h, c = lstm_cell_reference(x_t, h, c, w_ih, w_hh, b_ih, b_hh)
        return (h, c), h

    (h, c), ys = lax.scan(step, (h, c), jnp.transpose(x, (1, 0, 2)))
    return jnp.transpose(ys, (1, 0, 2)), h, c


if __name__ == "__main__":
    key = jax.random.PRNGKey(0)
    (k_param, k_x, k_h, k_c, k_xs, k_xs2, k_h2, k_c2) = jax.random.split(key, 8)

    B, T, I, H = 4, 8, 16, 32
    cell = LSTMCellPallas(input_size=I, hidden_size=H, key=k_param)

    # 1) LSTMCell forward, no initial state (matches the PyTorch module spec).
    x_step = jax.random.normal(k_x, (B, I), jnp.float32)
    st = cell(x_step)
    h = jax.block_until_ready(st.h)
    c = jax.block_until_ready(st.c)
    h_r, c_r = lstm_cell_reference(x_step, jnp.zeros((B, H)), jnp.zeros((B, H)),
                                   cell.w_ih, cell.w_hh, cell.b_ih, cell.b_hh)
    assert h.shape == (B, H) and c.shape == (B, H)
    assert jnp.allclose(h, h_r, atol=1e-5, rtol=1e-5)
    assert jnp.allclose(c, c_r, atol=1e-5, rtol=1e-5)

    # 2) LSTMCell forward with an explicit (h, c) state.
    h_in = jax.random.normal(k_h, (B, H), jnp.float32) * 0.5
    c_in = jax.random.normal(k_c, (B, H), jnp.float32) * 0.5
    st2 = cell(x_step, LSTMStateTuple(h_in, c_in))
    h2 = jax.block_until_ready(st2.h)
    c2 = jax.block_until_ready(st2.c)
    h2_r, c2_r = lstm_cell_reference(x_step, h_in, c_in, cell.w_ih, cell.w_hh,
                                     cell.b_ih, cell.b_hh)
    assert jnp.allclose(h2, h2_r, atol=1e-5, rtol=1e-5)
    assert jnp.allclose(c2, c2_r, atol=1e-5, rtol=1e-5)

    # 3) Sequence driver, fp32 gate storage, auto (VMEM-budget-derived) time chunk.
    x_seq = jax.random.normal(k_xs, (B, T, I), jnp.float32)
    out, h3, c3 = lstm_forward(x_seq, cell.w_ih, cell.w_hh, cell.b_ih, cell.b_hh,
                               time_chunk=None, gates_bf16=False)
    out = jax.block_until_ready(out)
    out_r, h3_r, c3_r = lstm_sequence_reference(x_seq, cell.w_ih, cell.w_hh,
                                                cell.b_ih, cell.b_hh)
    assert out.shape == (B, T, H)
    assert jnp.allclose(out, out_r, atol=1e-5, rtol=1e-5)
    assert jnp.allclose(h3, h3_r, atol=1e-5, rtol=1e-5)
    assert jnp.allclose(c3, c3_r, atol=1e-5, rtol=1e-5)

    # 4) Sequence driver with bf16 gate storage (fp32 math), ragged T (tail mask on the
    #    last chunk only), and a non-zero initial state.
    B2, T2 = 16, 6
    x_seq2 = jax.random.normal(k_xs2, (B2, T2, I), jnp.float32)
    h0 = jax.random.normal(k_h2, (B2, H), jnp.float32) * 0.5
    c0 = jax.random.normal(k_c2, (B2, H), jnp.float32) * 0.5
    out2, h4, c4 = lstm_forward(x_seq2, cell.w_ih, cell.w_hh, cell.b_ih, cell.b_hh,
                                h0, c0, time_chunk=4, gates_bf16=True)
    out2 = jax.block_until_ready(out2)
    out2_r, h4_r, c4_r = lstm_sequence_reference(x_seq2, cell.w_ih, cell.w_hh,
                                                 cell.b_ih, cell.b_hh, h0, c0)
    assert out2.shape == (B2, T2, H)
    assert jnp.allclose(out2, out2_r, atol=5e-2, rtol=5e-2)
    assert jnp.allclose(h4, h4_r, atol=5e-2, rtol=5e-2)
    assert jnp.allclose(c4, c4_r, atol=5e-2, rtol=5e-2)

    print("KERNEL_OK")
</pallas_src>

<mosaic_0001>
module attributes {stable_mosaic.version = 11 : i64} {
  func.func @_lstm_chunk_kernel(%arg0: i32, %arg1: i32, %arg2: memref<1x8x512xf32, #tpu.memory_space<vmem>>, %arg3: memref<128x512xf32, #tpu.memory_space<vmem>>, %arg4: memref<8x128xf32, #tpu.memory_space<vmem>>, %arg5: memref<8x128xf32, #tpu.memory_space<vmem>>, %arg6: memref<1x8x128xf32, #tpu.memory_space<vmem>>, %arg7: memref<8x128xf32, #tpu.memory_space<vmem>>, %arg8: memref<8x128xf32, #tpu.memory_space<vmem>>) attributes {dimension_semantics = [#tpu.dimension_semantics<parallel>, #tpu.dimension_semantics<arbitrary>], iteration_bounds = array<i64: 1, 1>, scalar_prefetch = 0 : i64, scratch_operands = 0 : i64, tpu.core_type = #tpu.core_type<tc>, window_params = [{transform_indices = @transform_0, window_bounds = array<i64: 1, 8, 512>}, {pipeline_mode = #tpu.pipeline_mode<synchronous>, transform_indices = @transform_1, window_bounds = array<i64: 128, 512>}, {transform_indices = @transform_2, window_bounds = array<i64: 8, 128>}, {transform_indices = @transform_3, window_bounds = array<i64: 8, 128>}, {transform_indices = @transform_4, window_bounds = array<i64: 1, 8, 128>}, {transform_indices = @transform_5, window_bounds = array<i64: 8, 128>}, {transform_indices = @transform_6, window_bounds = array<i64: 8, 128>}]} {
    %c0_i32 = arith.constant 0 : i32
    %0 = arith.cmpi eq, %arg1, %c0_i32 : i32
    %1 = arith.extui %0 : i1 to i32
    %c0_i32_0 = arith.constant 0 : i32
    %2 = arith.cmpi ne, %1, %c0_i32_0 : i32
    scf.if %2 {
      %c0_25 = arith.constant 0 : index
      %c0_26 = arith.constant 0 : index
      %46 = vector.load %arg4[%c0_25, %c0_26] : memref<8x128xf32, #tpu.memory_space<vmem>>, vector<8x128xf32>
      %c0_27 = arith.constant 0 : index
      %c0_28 = arith.constant 0 : index
      %47 = vector.load %arg7[%c0_27, %c0_28] : memref<8x128xf32, #tpu.memory_space<vmem>>, vector<8x128xf32>
      tpu.vector_store %arg7[%c0_27, %c0_28], %46 {strides = array<i32>} : memref<8x128xf32, #tpu.memory_space<vmem>>, vector<8x128xf32>,
      %c0_29 = arith.constant 0 : index
      %c0_30 = arith.constant 0 : index
      %48 = vector.load %arg5[%c0_29, %c0_30] : memref<8x128xf32, #tpu.memory_space<vmem>>, vector<8x128xf32>
      %c0_31 = arith.constant 0 : index
      %c0_32 = arith.constant 0 : index
      %49 = vector.load %arg8[%c0_31, %c0_32] : memref<8x128xf32, #tpu.memory_space<vmem>>, vector<8x128xf32>
      tpu.vector_store %arg8[%c0_31, %c0_32], %48 {strides = array<i32>} : memref<8x128xf32, #tpu.memory_space<vmem>>, vector<8x128xf32>,
    } else {
    }
    %c0 = arith.constant 0 : index
    %c0_1 = arith.constant 0 : index
    %3 = vector.load %arg7[%c0, %c0_1] : memref<8x128xf32, #tpu.memory_space<vmem>>, vector<8x128xf32>
    %c0_2 = arith.constant 0 : index
    %c0_3 = arith.constant 0 : index
    %4 = vector.load %arg8[%c0_2, %c0_3] : memref<8x128xf32, #tpu.memory_space<vmem>>, vector<8x128xf32>
    %c0_4 = arith.constant 0 : index
    %c0_5 = arith.constant 0 : index
    %5 = vector.load %arg3[%c0_4, %c0_5] : memref<128x512xf32, #tpu.memory_space<vmem>>, vector<128x512xf32>
    %c0_6 = arith.constant 0 : index
    %c0_7 = arith.constant 0 : index
    %c0_8 = arith.constant 0 : index
    %6 = vector.load %arg2[%c0_6, %c0_7, %c0_8] : memref<1x8x512xf32, #tpu.memory_space<vmem>>, vector<1x8x512xf32>
    %7 = vector.shape_cast %6 : vector<1x8x512xf32> to vector<8x512xf32>
    %cst = arith.constant dense<0.000000e+00> : vector<8x512xf32>
    %8 = tpu.matmul %3, %5, %cst {dimension_numbers = #tpu.dot_dimension_numbers<[1], [0], [0], [1], [0, 0, 1, 1], [], []>} : vector<8x128xf32>, vector<128x512xf32>, vector<8x512xf32> -> vector<8x512xf32>
    %9 = arith.addf %7, %8 : vector<8x512xf32>
    %10 = vector.extract_strided_slice %9 {offsets = [0, 0], sizes = [8, 128], strides = [1, 1]} : vector<8x512xf32> to vector<8x128xf32>
    %cst_9 = arith.constant 5.000000e-01 : f32
    %11 = vector.broadcast %cst_9 : f32 to vector<8x128xf32>
    %12 = arith.mulf %11, %10 : vector<8x128xf32>
    %13 = math.tanh %12 : vector<8x128xf32>
    %cst_10 = arith.constant 5.000000e-01 : f32
    %14 = vector.broadcast %cst_10 : f32 to vector<8x128xf32>
    %15 = arith.mulf %14, %13 : vector<8x128xf32>
    %cst_11 = arith.constant 5.000000e-01 : f32
    %16 = vector.broadcast %cst_11 : f32 to vector<8x128xf32>
    %17 = arith.addf %15, %16 : vector<8x128xf32>
    %18 = vector.extract_strided_slice %9 {offsets = [0, 128], sizes = [8, 128], strides = [1, 1]} : vector<8x512xf32> to vector<8x128xf32>
    %cst_12 = arith.constant 5.000000e-01 : f32
    %19 = vector.broadcast %cst_12 : f32 to vector<8x128xf32>
    %20 = arith.mulf %19, %18 : vector<8x128xf32>
    %21 = math.tanh %20 : vector<8x128xf32>
    %cst_13 = arith.constant 5.000000e-01 : f32
    %22 = vector.broadcast %cst_13 : f32 to vector<8x128xf32>
    %23 = arith.mulf %22, %21 : vector<8x128xf32>
    %cst_14 = arith.constant 5.000000e-01 : f32
    %24 = vector.broadcast %cst_14 : f32 to vector<8x128xf32>
    %25 = arith.addf %23, %24 : vector<8x128xf32>
    %26 = vector.extract_strided_slice %9 {offsets = [0, 256], sizes = [8, 128], strides = [1, 1]} : vector<8x512xf32> to vector<8x128xf32>
    %27 = math.tanh %26 : vector<8x128xf32>
    %28 = vector.extract_strided_slice %9 {offsets = [0, 384], sizes = [8, 128], strides = [1, 1]} : vector<8x512xf32> to vector<8x128xf32>
    %cst_15 = arith.constant 5.000000e-01 : f32
    %29 = vector.broadcast %cst_15 : f32 to vector<8x128xf32>
    %30 = arith.mulf %29, %28 : vector<8x128xf32>
    %31 = math.tanh %30 : vector<8x128xf32>
    %cst_16 = arith.constant 5.000000e-01 : f32
    %32 = vector.broadcast %cst_16 : f32 to vector<8x128xf32>
    %33 = arith.mulf %32, %31 : vector<8x128xf32>
    %cst_17 = arith.constant 5.000000e-01 : f32
    %34 = vector.broadcast %cst_17 : f32 to vector<8x128xf32>
    %35 = arith.addf %33, %34 : vector<8x128xf32>
    %36 = arith.mulf %25, %4 : vector<8x128xf32>
    %37 = arith.mulf %17, %27 : vector<8x128xf32>
    %38 = arith.addf %36, %37 : vector<8x128xf32>
    %39 = math.tanh %38 : vector<8x128xf32>
    %40 = arith.mulf %35, %39 : vector<8x128xf32>
    %c0_18 = arith.constant 0 : index
    %c0_19 = arith.constant 0 : index
    %c0_20 = arith.constant 0 : index
    %41 = vector.load %arg6[%c0_18, %c0_19, %c0_20] : memref<1x8x128xf32, #tpu.memory_space<vmem>>, vector<1x8x128xf32>
    %42 = vector.shape_cast %41 : vector<1x8x128xf32> to vector<8x128xf32>
    %43 = vector.shape_cast %40 : vector<8x128xf32> to vector<1x8x128xf32>
    tpu.vector_store %arg6[%c0_18, %c0_19, %c0_20], %43 {strides = array<i32>} : memref<1x8x128xf32, #tpu.memory_space<vmem>>, vector<1x8x128xf32>,
    %c0_21 = arith.constant 0 : index
    %c0_22 = arith.constant 0 : index
    %44 = vector.load %arg7[%c0_21, %c0_22] : memref<8x128xf32, #tpu.memory_space<vmem>>, vector<8x128xf32>
    tpu.vector_store %arg7[%c0_21, %c0_22], %40 {strides = array<i32>} : memref<8x128xf32, #tpu.memory_space<vmem>>, vector<8x128xf32>,
    %c0_23 = arith.constant 0 : index
    %c0_24 = arith.constant 0 : index
    %45 = vector.load %arg8[%c0_23, %c0_24] : memref<8x128xf32, #tpu.memory_space<vmem>>, vector<8x128xf32>
    tpu.vector_store %arg8[%c0_23, %c0_24], %38 {strides = array<i32>} : memref<8x128xf32, #tpu.memory_space<vmem>>, vector<8x128xf32>,
    return
  }
  func.func @transform_0(%arg0: i32, %arg1: i32) -> (i32, i32, i32) {
    %c0_i32 = arith.constant 0 : i32
    %c0_i32_0 = arith.constant 0 : i32
    return %arg1, %arg0, %c0_i32 : i32, i32, i32
  }
  func.func @transform_1(%arg0: i32, %arg1: i32) -> (i32, i32) {
    %c0_i32 = arith.constant 0 : i32
    %c0_i32_0 = arith.constant 0 : i32
    %c0_i32_1 = arith.constant 0 : i32
    return %c0_i32, %c0_i32_0 : i32, i32
  }
  func.func @transform_2(%arg0: i32, %arg1: i32) -> (i32, i32) {
    %c0_i32 = arith.constant 0 : i32
    %c0_i32_0 = arith.constant 0 : i32
    return %arg0, %c0_i32 : i32, i32
  }
  func.func @transform_3(%arg0: i32, %arg1: i32) -> (i32, i32) {
    %c0_i32 = arith.constant 0 : i32
    %c0_i32_0 = arith.constant 0 : i32
    return %arg0, %c0_i32 : i32, i32
  }
  func.func @transform_4(%arg0: i32, %arg1: i32) -> (i32, i32, i32) {
    %c0_i32 = arith.constant 0 : i32
    %c0_i32_0 = arith.constant 0 : i32
    return %arg1, %arg0, %c0_i32 : i32, i32, i32
  }
  func.func @transform_5(%arg0: i32, %arg1: i32) -> (i32, i32) {
    %c0_i32 = arith.constant 0 : i32
    %c0_i32_0 = arith.constant 0 : i32
    return %arg0, %c0_i32 : i32, i32
  }
  func.func @transform_6(%arg0: i32, %arg1: i32) -> (i32, i32) {
    %c0_i32 = arith.constant 0 : i32
    %c0_i32_0 = arith.constant 0 : i32
    return %arg0, %c0_i32 : i32, i32
  }
}

</mosaic_0001>

<bundles_post_ra>
// kernel: lstm_forward.1
= control target key start
LH: loop header
LB: loop body
LE: loop exit
PB: predicated region body
PF: predicated region fallthrough
CT: control target
= control target key end

     0   :  { %v288_v3 = vmov 0.0   ;;  %s543_s1 = inlined_call_operand.vmem [shape: f32[128,512], index: 1, kind: input, shape index: {}]   ;;  %s544_s2 = inlined_call_operand.vmem [shape: f32[8,128], index: 2, kind: input, shape index: {}, may-alias: {2,3}]   ;;  %s545_s0 = inlined_call_operand.vmem [shape: f32[1,8,512], index: 0, kind: input, shape index: {}]   ;;  %s546_s3 = inlined_call_operand.vmem [shape: f32[8,128], index: 3, kind: input, shape index: {}, may-alias: {2,3}]   ;;  %s547_s6 = inlined_call_operand.vmem [shape: f32[8,128], index: 6, kind: output, shape index: {2}]   ;;  %s548_s5 = inlined_call_operand.vmem [shape: f32[8,128], index: 5, kind: output, shape index: {1}]   ;;  %s549_s4 = inlined_call_operand.vmem [shape: f32[1,8,128], index: 4, kind: output, shape index: {0}]  }
   0x1   :  { %v91_v0 = vld [vmem:[%s543_s1 + $0x1e8] sm:$0xff]  ;;  %v90_v1 = vld [vmem:[%s543_s1 + $0x1e0] sm:$0xff]  ;;  %162 = vmatprep.mubr.f32.mxu0 %v288_v3  ;;  %233 = vmatprep.mubr.f32.mxu1 %v288_v3  ;;  %v93_v6 = vld [vmem:[%s543_s1 + $0x1f8] sm:$0xff] }
   0x2   :  { %v87_v2 = vld [vmem:[%s543_s1 + $0x1c8] sm:$0xff]  ;;  %98 = vmatprep.subr.mxu0 %v91_v0  ;;  %v86_v4 = vld [vmem:[%s543_s1 + $0x1c0] sm:$0xff]  ;;  %169 = vmatprep.subr.mxu1 %v93_v6  ;;  %v92_v8 = vld [vmem:[%s543_s1 + $0x1f0] sm:$0xff] }
   0x3   :  { %99 = vmatpush1.msra.mxu0 %v90_v1  ;;  %v83_v5 = vld [vmem:[%s543_s1 + $0x1a8] sm:$0xff]  ;;  %v82_v7 = vld [vmem:[%s543_s1 + $0x1a0] sm:$0xff]  ;;  %v89_v9 = vld [vmem:[%s543_s1 + $0x1d8] sm:$0xff]  ;;  %170 = vmatpush1.msra.mxu1 %v92_v8 }
   0x4   :  { %100 = vmatprep.subr.mxu0 %v87_v2  ;;  %v79_v10 = vld [vmem:[%s543_s1 + $0x188] sm:$0xff]  ;;  %v88_v11 = vld [vmem:[%s543_s1 + $0x1d0] sm:$0xff]  ;;  %v78_v12 = vld [vmem:[%s543_s1 + $0x180] sm:$0xff]  ;;  %171 = vmatprep.subr.mxu1 %v89_v9 }
   0x5   :  { %101 = vmatpush1.msra.mxu0 %v86_v4  ;;  %v85_v13 = vld [vmem:[%s543_s1 + $0x1b8] sm:$0xff]  ;;  %v84_v14 = vld [vmem:[%s543_s1 + $0x1b0] sm:$0xff]  ;;  %v75_v15 = vld [vmem:[%s543_s1 + $0x168] sm:$0xff]  ;;  %172 = vmatpush1.msra.mxu1 %v88_v11 }
   0x6   :  { %102 = vmatprep.subr.mxu0 %v83_v5  ;;  %v81_v16 = vld [vmem:[%s543_s1 + $0x198] sm:$0xff]  ;;  %v74_v17 = vld [vmem:[%s543_s1 + $0x160] sm:$0xff]  ;;  %173 = vmatprep.subr.mxu1 %v85_v13  ;;  %v80_v18 = vld [vmem:[%s543_s1 + $0x190] sm:$0xff] }
   0x7   :  { %103 = vmatpush1.msra.mxu0 %v82_v7  ;;  %v71_v19 = vld [vmem:[%s543_s1 + $0x148] sm:$0xff]  ;;  %174 = vmatpush1.msra.mxu1 %v84_v14  ;;  %v77_v20 = vld [vmem:[%s543_s1 + $0x178] sm:$0xff]  ;;  %v70_v21 = vld [vmem:[%s543_s1 + $0x140] sm:$0xff] }
   0x8   :  { %104 = vmatprep.subr.mxu0 %v79_v10  ;;  %175 = vmatprep.subr.mxu1 %v81_v16  ;;  %v76_v22 = vld [vmem:[%s543_s1 + $0x170] sm:$0xff]  ;;  %v67_v23 = vld [vmem:[%s543_s1 + $0x128] sm:$0xff]  ;;  %v73_v24 = vld [vmem:[%s543_s1 + $0x158] sm:$0xff] }
   0x9   :  { %105 = vmatpush1.msra.mxu0 %v78_v12  ;;  %176 = vmatpush1.msra.mxu1 %v80_v18  ;;  %v66_v25 = vld [vmem:[%s543_s1 + $0x120] sm:$0xff]  ;;  %v72_v26 = vld [vmem:[%s543_s1 + $0x150] sm:$0xff]  ;;  %v63_v27 = vld [vmem:[%s543_s1 + $0x108] sm:$0xff] }
   0xa   :  { %106 = vmatprep.subr.mxu0 %v75_v15  ;;  %177 = vmatprep.subr.mxu1 %v77_v20  ;;  %v69_v28 = vld [vmem:[%s543_s1 + $0x138] sm:$0xff]  ;;  %v62_v29 = vld [vmem:[%s543_s1 + $0x100] sm:$0xff]  ;;  %v68_v30 = vld [vmem:[%s543_s1 + $0x130] sm:$0xff] }
   0xb   :  { %107 = vmatpush1.msra.mxu0 %v74_v17  ;;  %178 = vmatpush1.msra.mxu1 %v76_v22  ;;  %v59_v31 = vld [vmem:[%s543_s1 + $0xe8] sm:$0xff]  ;;  %v65_v32 = vld [vmem:[%s543_s1 + $0x118] sm:$0xff]  ;;  %v58_v33 = vld [vmem:[%s543_s1 + $0xe0] sm:$0xff] }
   0xc   :  { %108 = vmatprep.subr.mxu0 %v71_v19  ;;  %179 = vmatprep.subr.mxu1 %v73_v24  ;;  %v64_v34 = vld [vmem:[%s543_s1 + $0x110] sm:$0xff]  ;;  %v55_v35 = vld [vmem:[%s543_s1 + $0xc8] sm:$0xff]  ;;  %v61_v36 = vld [vmem:[%s543_s1 + $0xf8] sm:$0xff] }
   0xd   :  { %109 = vmatpush1.msra.mxu0 %v70_v21  ;;  %180 = vmatpush1.msra.mxu1 %v72_v26  ;;  %v54_v37 = vld [vmem:[%s543_s1 + $0xc0] sm:$0xff]  ;;  %v60_v38 = vld [vmem:[%s543_s1 + $0xf0] sm:$0xff]  ;;  %v51_v39 = vld [vmem:[%s543_s1 + $0xa8] sm:$0xff] }
   0xe   :  { %110 = vmatprep.subr.mxu0 %v67_v23  ;;  %181 = vmatprep.subr.mxu1 %v69_v28  ;;  %v57_v40 = vld [vmem:[%s543_s1 + $0xd8] sm:$0xff]  ;;  %v50_v41 = vld [vmem:[%s543_s1 + $0xa0] sm:$0xff]  ;;  %v56_v42 = vld [vmem:[%s543_s1 + $0xd0] sm:$0xff] }
   0xf   :  { %111 = vmatpush1.msra.mxu0 %v66_v25  ;;  %182 = vmatpush1.msra.mxu1 %v68_v30  ;;  %v47_v43 = vld [vmem:[%s543_s1 + $0x88] sm:$0xff]  ;;  %v53_v44 = vld [vmem:[%s543_s1 + $0xb8] sm:$0xff]  ;;  %v46_v45 = vld [vmem:[%s543_s1 + $0x80] sm:$0xff] }
  0x10   :  { %112 = vmatprep.subr.mxu0 %v63_v27  ;;  %183 = vmatprep.subr.mxu1 %v65_v32  ;;  %v52_v46 = vld [vmem:[%s543_s1 + $0xb0] sm:$0xff]  ;;  %v43_v47 = vld [vmem:[%s543_s1 + $0x68] sm:$0xff]  ;;  %v49_v48 = vld [vmem:[%s543_s1 + $0x98] sm:$0xff] }
  0x11   :  { %113 = vmatpush1.msra.mxu0 %v62_v29  ;;  %184 = vmatpush1.msra.mxu1 %v64_v34  ;;  %v42_v49 = vld [vmem:[%s543_s1 + $0x60] sm:$0xff]  ;;  %v48_v50 = vld [vmem:[%s543_s1 + $0x90] sm:$0xff]  ;;  %v39_v51 = vld [vmem:[%s543_s1 + $0x48] sm:$0xff] }
  0x12   :  { %114 = vmatprep.subr.mxu0 %v59_v31  ;;  %185 = vmatprep.subr.mxu1 %v61_v36  ;;  %v45_v52 = vld [vmem:[%s543_s1 + $0x78] sm:$0xff]  ;;  %v38_v53 = vld [vmem:[%s543_s1 + $0x40] sm:$0xff]  ;;  %v44_v54 = vld [vmem:[%s543_s1 + $0x70] sm:$0xff] }
  0x13   :  { %115 = vmatpush1.msra.mxu0 %v58_v33  ;;  %186 = vmatpush1.msra.mxu1 %v60_v38  ;;  %v35_v55 = vld [vmem:[%s543_s1 + $0x28] sm:$0xff]  ;;  %v41_v56 = vld [vmem:[%s543_s1 + $0x58] sm:$0xff]  ;;  %v34_v57 = vld [vmem:[%s543_s1 + $0x20] sm:$0xff] }
  0x14   :  { %116 = vmatprep.subr.mxu0 %v55_v35  ;;  %187 = vmatprep.subr.mxu1 %v57_v40  ;;  %v40_v58 = vld [vmem:[%s543_s1 + $0x50] sm:$0xff]  ;;  %v31_v59 = vld [vmem:[%s543_s1 + $0x8] sm:$0xff]  ;;  %v37_v60 = vld [vmem:[%s543_s1 + $0x38] sm:$0xff] }
  0x15   :  { %117 = vmatpush1.msra.mxu0 %v54_v37  ;;  %188 = vmatpush1.msra.mxu1 %v56_v42  ;;  %v30_v61 = vld [vmem:[%s543_s1] sm:$0xff]  ;;  %v36_v62 = vld [vmem:[%s543_s1 + $0x30] sm:$0xff]  ;;  %v33_v0 = vld [vmem:[%s543_s1 + $0x18] sm:$0xff] }
  0x16   :  { %118 = vmatprep.subr.mxu0 %v51_v39  ;;  %189 = vmatprep.subr.mxu1 %v53_v44  ;;  %v24_v63 = vld [vmem:[%s544_s2] sm:$0xff]  ;;  %v32_v1 = vld [vmem:[%s543_s1 + $0x10] sm:$0xff]  ;;  %v95_v4 = vld [vmem:[%s545_s0 + $0x8] sm:$0xff] }
  0x17   :  { %119 = vmatpush1.msra.mxu0 %v50_v41  ;;  %190 = vmatpush1.msra.mxu1 %v52_v46  ;;  %v94_v2 = vld [vmem:[%s545_s0] sm:$0xff]  ;;  %v96_v7 = vld [vmem:[%s545_s0 + $0x10] sm:$0xff]  ;;  %v97_v13 = vld [vmem:[%s545_s0 + $0x18] sm:$0xff] }
  0x18   :  { %120 = vmatprep.subr.mxu0 %v47_v43  ;;  %191 = vmatprep.subr.mxu1 %v49_v48  ;;  %v26_v23 = vld [vmem:[%s546_s3] sm:$0xff] }
  0x19   :  { %121 = vmatpush1.msra.mxu0 %v46_v45  ;;  %192 = vmatpush1.msra.mxu1 %v48_v50 }
  0x1a   :  { %122 = vmatprep.subr.mxu0 %v43_v47  ;;  %193 = vmatprep.subr.mxu1 %v45_v52 }
  0x1b   :  { %123 = vmatpush1.msra.mxu0 %v42_v49  ;;  %194 = vmatpush1.msra.mxu1 %v44_v54 }
  0x1c   :  { %124 = vmatprep.subr.mxu0 %v39_v51  ;;  %195 = vmatprep.subr.mxu1 %v41_v56 }
  0x1d   :  { %125 = vmatpush1.msra.mxu0 %v38_v53  ;;  %196 = vmatpush1.msra.mxu1 %v40_v58 }
  0x1e   :  { %126 = vmatprep.subr.mxu0 %v35_v55  ;;  %197 = vmatprep.subr.mxu1 %v37_v60 }
  0x1f   :  { %127 = vmatpush1.msra.mxu0 %v34_v57  ;;  %198 = vmatpush1.msra.mxu1 %v36_v62 }
  0x20   :  { %128 = vmatprep.subr.mxu0 %v31_v59  ;;  %199 = vmatprep.subr.mxu1 %v33_v0 }
  0x21   :  { %129 = vmatpush1.msra.mxu0 %v30_v61  ;;  %200 = vmatpush1.msra.mxu1 %v32_v1 }
  0x22   :  { %163 = vmatmul.mubr.f32.vlgmr.msra.gmra.mxu0 %v24_v63  ;;  %234 = vmatmul.mubr.f32.vlgmr.msra.gmra.mxu1 %v24_v63 }
  0xe2   :  { %v164_v3 = vpop.f32.mrf.mxu0  ;;  %v235_v8 = vpop.f32.mrf.mxu1 }
  0xe3   :  { %v240_v5 = vadd.f32 %v164_v3, %v94_v2  ;;  %v242_v12 = vadd.f32 %v235_v8, %v96_v7 }
  0xe4   :  { %v166_v6 = vpop.f32.mrf.mxu0  ;;  %v237_v14 = vpop.f32.mrf.mxu1 }
  0xe5   :  { %v244_v9 = vmul.f32 0.5, %v240_v5  ;;  %v241_v10 = vadd.f32 %v166_v6, %v95_v4  ;;  %v243_v15 = vadd.f32 %v237_v14, %v97_v13 }
  0xe7   :  { %278 = vtanh.f32 %v244_v9  ;;  %v248_v11 = vmul.f32 0.5, %v241_v10  ;;  %v253_v16 = vmul.f32 0.5, %v243_v15 }
  0xe9   :  { %280 = vtanh.f32 %v248_v11 }
  0xea   :  { %282 = vtanh.f32 %v242_v12 }
  0xeb   :  { %284 = vtanh.f32 %v253_v16 }
  0xf4   :  { %v279_v17 = vpop.eup %278 }
  0xf5   :  { %v246_v18 = vmul.f32 0.5, %v279_v17 }
  0xf6   :  { %v281_v19 = vpop.eup %280 }
  0xf7   :  { %v247_v20 = vadd.f32 0.5, %v246_v18  ;;  %v250_v21 = vmul.f32 0.5, %v281_v19  ;;  %v283_v22 = vpop.eup %282 }
  0xf8   :  { %v285_v28 = vpop.eup %284 }
  0xf9   :  { %v251_v24 = vadd.f32 0.5, %v250_v21  ;;  %v258_v26 = vmul.f32 %v283_v22, %v247_v20  ;;  %v255_v29 = vmul.f32 0.5, %v285_v28 }
  0xfb   :  { %v257_v25 = vmul.f32 %v251_v24, %v26_v23  ;;  %v256_v30 = vadd.f32 0.5, %v255_v29 }
  0xfd   :  { %v259_v27 = vadd.f32 %v258_v26, %v257_v25 }
  0xff   :  { %286 = vtanh.f32 %v259_v27  ;;  %264 = vst [vmem:[%s547_s6] sm:$0xff] %v259_v27 }
 0x10c   :  { %v287_v31 = vpop.eup %286 }
 0x10d   :  { %v261_v32 = vmul.f32 %v287_v31, %v256_v30 }
 0x10f   :  { %262 = vst [vmem:[%s549_s4] sm:$0xff] %v261_v32  ;;  %263 = vst [vmem:[%s548_s5] sm:$0xff] %v261_v32 }

</bundles_post_ra>
